<compile_context>
chip_gen: v6e
topology: v6e:2x2x1
jax: 0.10.0
libtpu: 0.0.40
codegen_flags: <defaults>
</compile_context>

<pallas_src>
import functools

import jax
import jax.numpy as jnp
from jax.experimental import pallas as pl
from jax.experimental.pallas import tpu as pltpu

FC1, FC2, FC3 = 512, 256, 64


def actor_kernel(x_ref,
                 w1_ref, b1_ref,
                 w2_ref, b2_ref,
                 w3_ref, b3_ref,
                 w4_ref, b4_ref,
                 out_ref, *, bf16_relu):
    def bias_relu_bf16(h, b_ref):
        h = h + b_ref[...]
        if bf16_relu:
            # cast is monotone and preserves 0, so max(cast(x), 0) == cast(max(x, 0));
            # bf16 vregs pack (16,128) -> half the VALU-slot cost on v6e/v7x.
            return jnp.maximum(h.astype(jnp.bfloat16), 0)
        return jnp.maximum(h, 0.0).astype(jnp.bfloat16)

    # Layer 1: (TB, D_in) @ (D_in, 512) + (1, 512), ReLU.
    h = jnp.dot(x_ref[...].astype(jnp.bfloat16), w1_ref[...],
                preferred_element_type=jnp.float32)
    h = bias_relu_bf16(h, b1_ref)
    # Layer 2: (TB, 512) @ (512, 256) + (1, 256), ReLU.
    h = jnp.dot(h, w2_ref[...], preferred_element_type=jnp.float32)
    h = bias_relu_bf16(h, b2_ref)
    # Layer 3: (TB, 256) @ (256, 64) + (1, 64), ReLU.
    h = jnp.dot(h, w3_ref[...], preferred_element_type=jnp.float32)
    h = bias_relu_bf16(h, b3_ref)
    # Layer 4: (TB, 64) @ (64, n_actions) + (1, n_actions).
    logits = jnp.dot(h, w4_ref[...], preferred_element_type=jnp.float32)
    logits = logits + b4_ref[...]

    # Numerically-stable softmax over the action axis (the block covers the
    # full axis, so no lane padding leaks into the max/sum reductions).
    m = jnp.max(logits, axis=-1, keepdims=True)
    e = jnp.exp(logits - m)
    s = jnp.sum(e, axis=-1, keepdims=True)
    inv = pl.reciprocal(s, approx=True)
    inv = inv * (2.0 - s * inv)        # one Newton step -> near-exact normalization
    out_ref[...] = e * inv


def _device_kind():
    try:
        return jax.devices()[0].device_kind.lower()
    except Exception:  # pragma: no cover - interpret / CPU fallback
        return ""


def _use_bf16_relu():
    kind = _device_kind()
    # bf16 VALU exists on v6e and newer; keep f32 epilogues elsewhere (v5e...).
    return ("v6" in kind) or ("v7" in kind)


def _pick_batch_tile(batch):
    """Batch tile: same candidates on every chip; guarantee >=2 grid steps
    once B >= 256 so a 2-TensorCore chip (v7x) always gets parallel work."""
    if batch < 128:
        return batch                       # tiny batch: single full-B block
    if batch < 256:
        return 128
    tb = min(512, ((batch // 2) // 128) * 128)
    return max(tb, 128)


def prepare_params(params_f32):
    """Cast weights to bf16 once (halves HBM->VMEM traffic); biases stay f32."""
    return [(w.astype(jnp.bfloat16), b.astype(jnp.float32))
            for (w, b) in params_f32]


def _build_and_call(x_pad, params, tb, bf16_relu, single_buffer_weights):
    (w1, b1), (w2, b2), (w3, b3), (w4, b4) = params
    b_pad, d_in = x_pad.shape
    n_actions = w4.shape[1]
    grid = (b_pad // tb,)

    def resident(shape):
        # Constant index_map -> block is DMA'd once and stays hot in VMEM.
        idx_map = lambda i, _n=len(shape): (0,) * _n
        if single_buffer_weights:
            # Grid-invariant blocks don't need double buffering.
            return pl.BlockSpec(shape, idx_map, pipeline_mode=pl.Buffered(1))
        return pl.BlockSpec(shape, idx_map)

    in_specs = [
        pl.BlockSpec((tb, d_in), lambda i: (i, 0)),
        resident(w1.shape), resident(b1.shape),
        resident(w2.shape), resident(b2.shape),
        resident(w3.shape), resident(b3.shape),
        resident(w4.shape), resident(b4.shape),
    ]
    out_spec = pl.BlockSpec((tb, n_actions), lambda i: (i, 0))

    # VMEM footprint estimate: resident weights (+biases), double-buffered
    # activation tiles, live intermediates.  Only raise the scoped limit when
    # the default (~32 MiB) would be exceeded.
    weight_bytes = sum(int(w.size) * w.dtype.itemsize +
                       int(b.size) * b.dtype.itemsize for (w, b) in params)
    w_factor = 1 if single_buffer_weights else 2
    act_bytes = 2 * tb * d_in * 4 + 2 * tb * n_actions * 4
    inter_bytes = tb * (FC1 + FC2 + FC3) * 4
    vmem_needed = w_factor * weight_bytes + act_bytes + inter_bytes + (2 << 20)

    compiler_kwargs = dict(dimension_semantics=("parallel",))
    if vmem_needed > (30 << 20):
        compiler_kwargs["vmem_limit_bytes"] = int(min(vmem_needed, 64 << 20))

    flops = 2 * b_pad * (d_in * FC1 + FC1 * FC2 + FC2 * FC3 + FC3 * n_actions)
    bytes_accessed = (weight_bytes + int(x_pad.size) * 4
                      + b_pad * n_actions * 4)

    kernel = functools.partial(actor_kernel, bf16_relu=bf16_relu)
    return pl.pallas_call(
        kernel,
        out_shape=jax.ShapeDtypeStruct((b_pad, n_actions), jnp.float32),
        grid=grid,
        in_specs=in_specs,
        out_specs=out_spec,
        compiler_params=pltpu.CompilerParams(**compiler_kwargs),
        cost_estimate=pl.CostEstimate(
            flops=flops,
            transcendentals=b_pad * n_actions,
            bytes_accessed=bytes_accessed),
    )(x_pad, w1, b1, w2, b2, w3, b3, w4, b4)


def actor_forward(x, params):
    """Fused MLP + softmax.

    x: (B, D_in) f32; params from prepare_params (bf16 weights, f32 biases).
    Returns (B, n_actions) f32 categorical probabilities.
    """
    B, _ = x.shape
    tb = _pick_batch_tile(B)
    b_pad = ((B + tb - 1) // tb) * tb
    x_pad = jnp.pad(x, ((0, b_pad - B), (0, 0))) if b_pad != B else x
    bf16_relu = _use_bf16_relu()

    try:
        out = _build_and_call(x_pad, params, tb, bf16_relu,
                              single_buffer_weights=True)
    except Exception:
        # Older/newer pl.Buffered behavior: fall back to default pipelining.
        out = _build_and_call(x_pad, params, tb, bf16_relu,
                              single_buffer_weights=False)
    return out[:B] if b_pad != B else out


def init_linear(key, fan_in, fan_out):
    """Deterministic init mimicking PyTorch nn.Linear defaults (U(-k, k))."""
    k = 1.0 / jnp.sqrt(jnp.float32(fan_in))
    kw, kb = jax.random.split(key)
    w = jax.random.uniform(kw, (fan_in, fan_out), jnp.float32, -k, k)
    b = jax.random.uniform(kb, (1, fan_out), jnp.float32, -k, k)
    return w, b


def reference_forward(x, params, *, match_kernel_dtype):
    """Pure-JAX reference; optionally mirrors the kernel's bf16 matmuls."""
    h = x
    n = len(params)
    for i, (w, b) in enumerate(params):
        if match_kernel_dtype:
            h = jnp.dot(h.astype(jnp.bfloat16), w.astype(jnp.bfloat16),
                        preferred_element_type=jnp.float32)
        else:
            h = jnp.dot(h, w.astype(jnp.float32))
        h = h + b.astype(jnp.float32)
        if i < n - 1:
            h = jnp.maximum(h, 0.0)
    return jax.nn.softmax(h, axis=-1)


def _check(probs, x, params, params_f32):
    ref_bf16 = reference_forward(x, params, match_kernel_dtype=True)
    ref_f32 = reference_forward(x, params_f32, match_kernel_dtype=False)
    assert probs.shape == ref_f32.shape
    assert jnp.allclose(jnp.sum(probs, axis=-1), 1.0, atol=1e-5)
    assert jnp.allclose(probs, ref_bf16, atol=2e-3, rtol=2e-3)
    assert jnp.allclose(probs, ref_f32, atol=5e-2, rtol=5e-2)


if __name__ == "__main__":
    # Small shapes consistent with the module: input_dims=(32,), n_actions=4.
    input_dims = 32
    n_actions = 4

    key = jax.random.PRNGKey(0)
    k_x, k_x2, k1, k2, k3, k4 = jax.random.split(key, 6)

    params_f32 = [
        init_linear(k1, input_dims, FC1),
        init_linear(k2, FC1, FC2),
        init_linear(k3, FC2, FC3),
        init_linear(k4, FC3, n_actions),
    ]
    params = prepare_params(params_f32)  # bf16 weights, f32 biases (cast once)

    # Case 1: tiny batch (single block).
    x = jax.random.normal(k_x, (8, input_dims), jnp.float32)
    probs = jax.block_until_ready(actor_forward(x, params))
    _check(probs, x, params, params_f32)

    # Case 2: non-tile-divisible batch (exercises padding + multi-step grid).
    x2 = jax.random.normal(k_x2, (200, input_dims), jnp.float32)
    probs2 = jax.block_until_ready(actor_forward(x2, params))
    assert probs2.shape == (200, n_actions)
    _check(probs2, x2, params, params_f32)

    print("KERNEL_OK")
</pallas_src>

<mosaic_0001>
module attributes {stable_mosaic.version = 11 : i64} {
  func.func @actor_kernel(%arg0: i32, %arg1: memref<8x32xf32, #tpu.memory_space<vmem>>, %arg2: memref<32x512xbf16, #tpu.memory_space<vmem>>, %arg3: memref<1x512xf32, #tpu.memory_space<vmem>>, %arg4: memref<512x256xbf16, #tpu.memory_space<vmem>>, %arg5: memref<1x256xf32, #tpu.memory_space<vmem>>, %arg6: memref<256x64xbf16, #tpu.memory_space<vmem>>, %arg7: memref<1x64xf32, #tpu.memory_space<vmem>>, %arg8: memref<64x4xbf16, #tpu.memory_space<vmem>>, %arg9: memref<1x4xf32, #tpu.memory_space<vmem>>, %arg10: memref<8x4xf32, #tpu.memory_space<vmem>>) attributes {dimension_semantics = [#tpu.dimension_semantics<parallel>], iteration_bounds = array<i64: 1>, scalar_prefetch = 0 : i64, scratch_operands = 0 : i64, tpu.core_type = #tpu.core_type<tc>, window_params = [{transform_indices = @transform_0, window_bounds = array<i64: 8, 32>}, {pipeline_mode = #tpu.pipeline_mode<synchronous>, transform_indices = @transform_1, window_bounds = array<i64: 32, 512>}, {pipeline_mode = #tpu.pipeline_mode<synchronous>, transform_indices = @transform_2, window_bounds = array<i64: 1, 512>}, {pipeline_mode = #tpu.pipeline_mode<synchronous>, transform_indices = @transform_3, window_bounds = array<i64: 512, 256>}, {pipeline_mode = #tpu.pipeline_mode<synchronous>, transform_indices = @transform_4, window_bounds = array<i64: 1, 256>}, {pipeline_mode = #tpu.pipeline_mode<synchronous>, transform_indices = @transform_5, window_bounds = array<i64: 256, 64>}, {pipeline_mode = #tpu.pipeline_mode<synchronous>, transform_indices = @transform_6, window_bounds = array<i64: 1, 64>}, {pipeline_mode = #tpu.pipeline_mode<synchronous>, transform_indices = @transform_7, window_bounds = array<i64: 64, 4>}, {pipeline_mode = #tpu.pipeline_mode<synchronous>, transform_indices = @transform_8, window_bounds = array<i64: 1, 4>}, {transform_indices = @transform_9, window_bounds = array<i64: 8, 4>}]} {
    %c0 = arith.constant 0 : index
    %c0_0 = arith.constant 0 : index
    %0 = vector.load %arg1[%c0, %c0_0] : memref<8x32xf32, #tpu.memory_space<vmem>>, vector<8x32xf32>
    %1 = arith.truncf %0 : vector<8x32xf32> to vector<8x32xbf16>
    %c0_1 = arith.constant 0 : index
    %c0_2 = arith.constant 0 : index
    %2 = vector.load %arg2[%c0_1, %c0_2] : memref<32x512xbf16, #tpu.memory_space<vmem>>, vector<32x512xbf16>
    %cst = arith.constant dense<0.000000e+00> : vector<8x512xf32>
    %3 = tpu.matmul %1, %2, %cst {dimension_numbers = #tpu.dot_dimension_numbers<[1], [0], [0], [1], [0, 0, 1, 1], [], []>} : vector<8x32xbf16>, vector<32x512xbf16>, vector<8x512xf32> -> vector<8x512xf32>
    %c0_3 = arith.constant 0 : index
    %c0_4 = arith.constant 0 : index
    %4 = vector.load %arg3[%c0_3, %c0_4] : memref<1x512xf32, #tpu.memory_space<vmem>>, vector<1x512xf32>
    %5 = vector.broadcast %4 : vector<1x512xf32> to vector<8x512xf32>
    %6 = arith.addf %3, %5 : vector<8x512xf32>
    %cst_5 = arith.constant 0.000000e+00 : f32
    %7 = vector.broadcast %cst_5 : f32 to vector<8x512xf32>
    %8 = arith.maximumf %6, %7 : vector<8x512xf32>
    %9 = arith.truncf %8 : vector<8x512xf32> to vector<8x512xbf16>
    %c0_6 = arith.constant 0 : index
    %c0_7 = arith.constant 0 : index
    %10 = vector.load %arg4[%c0_6, %c0_7] : memref<512x256xbf16, #tpu.memory_space<vmem>>, vector<512x256xbf16>
    %cst_8 = arith.constant dense<0.000000e+00> : vector<8x256xf32>
    %11 = tpu.matmul %9, %10, %cst_8 {dimension_numbers = #tpu.dot_dimension_numbers<[1], [0], [0], [1], [0, 0, 1, 1], [], []>} : vector<8x512xbf16>, vector<512x256xbf16>, vector<8x256xf32> -> vector<8x256xf32>
    %c0_9 = arith.constant 0 : index
    %c0_10 = arith.constant 0 : index
    %12 = vector.load %arg5[%c0_9, %c0_10] : memref<1x256xf32, #tpu.memory_space<vmem>>, vector<1x256xf32>
    %13 = vector.broadcast %12 : vector<1x256xf32> to vector<8x256xf32>
    %14 = arith.addf %11, %13 : vector<8x256xf32>
    %cst_11 = arith.constant 0.000000e+00 : f32
    %15 = vector.broadcast %cst_11 : f32 to vector<8x256xf32>
    %16 = arith.maximumf %14, %15 : vector<8x256xf32>
    %17 = arith.truncf %16 : vector<8x256xf32> to vector<8x256xbf16>
    %c0_12 = arith.constant 0 : index
    %c0_13 = arith.constant 0 : index
    %18 = vector.load %arg6[%c0_12, %c0_13] : memref<256x64xbf16, #tpu.memory_space<vmem>>, vector<256x64xbf16>
    %cst_14 = arith.constant dense<0.000000e+00> : vector<8x64xf32>
    %19 = tpu.matmul %17, %18, %cst_14 {dimension_numbers = #tpu.dot_dimension_numbers<[1], [0], [0], [1], [0, 0, 1, 1], [], []>} : vector<8x256xbf16>, vector<256x64xbf16>, vector<8x64xf32> -> vector<8x64xf32>
    %c0_15 = arith.constant 0 : index
    %c0_16 = arith.constant 0 : index
    %20 = vector.load %arg7[%c0_15, %c0_16] : memref<1x64xf32, #tpu.memory_space<vmem>>, vector<1x64xf32>
    %21 = vector.broadcast %20 : vector<1x64xf32> to vector<8x64xf32>
    %22 = arith.addf %19, %21 : vector<8x64xf32>
    %cst_17 = arith.constant 0.000000e+00 : f32
    %23 = vector.broadcast %cst_17 : f32 to vector<8x64xf32>
    %24 = arith.maximumf %22, %23 : vector<8x64xf32>
    %25 = arith.truncf %24 : vector<8x64xf32> to vector<8x64xbf16>
    %c0_18 = arith.constant 0 : index
    %c0_19 = arith.constant 0 : index
    %26 = vector.load %arg8[%c0_18, %c0_19] : memref<64x4xbf16, #tpu.memory_space<vmem>>, vector<64x4xbf16>
    %cst_20 = arith.constant dense<0.000000e+00> : vector<8x4xf32>
    %27 = tpu.matmul %25, %26, %cst_20 {dimension_numbers = #tpu.dot_dimension_numbers<[1], [0], [0], [1], [0, 0, 1, 1], [], []>} : vector<8x64xbf16>, vector<64x4xbf16>, vector<8x4xf32> -> vector<8x4xf32>
    %c0_21 = arith.constant 0 : index
    %c0_22 = arith.constant 0 : index
    %28 = vector.load %arg9[%c0_21, %c0_22] : memref<1x4xf32, #tpu.memory_space<vmem>>, vector<1x4xf32>
    %29 = vector.broadcast %28 : vector<1x4xf32> to vector<8x4xf32>
    %30 = arith.addf %27, %29 : vector<8x4xf32>
    %cst_23 = arith.constant dense<0xFF800000> : vector<8xf32>
    %31 = vector.multi_reduction <maximumf>, %30, %cst_23 [1] : vector<8x4xf32> to vector<8xf32>
    %32 = vector.shape_cast %31 : vector<8xf32> to vector<8x1xf32>
    %33 = vector.broadcast %32 : vector<8x1xf32> to vector<8x4xf32>
    %34 = arith.subf %30, %33 : vector<8x4xf32>
    %35 = math.exp %34 : vector<8x4xf32>
    %cst_24 = arith.constant dense<0.000000e+00> : vector<8xf32>
    %36 = vector.multi_reduction <add>, %35, %cst_24 [1] : vector<8x4xf32> to vector<8xf32>
    %37 = vector.shape_cast %36 : vector<8xf32> to vector<8x1xf32>
    %38 = tpu.reciprocal %37 {approx = true} : vector<8x1xf32> -> vector<8x1xf32>
    %39 = arith.mulf %37, %38 : vector<8x1xf32>
    %cst_25 = arith.constant 2.000000e+00 : f32
    %40 = vector.broadcast %cst_25 : f32 to vector<8x1xf32>
    %41 = arith.subf %40, %39 : vector<8x1xf32>
    %42 = arith.mulf %38, %41 : vector<8x1xf32>
    %43 = vector.broadcast %42 : vector<8x1xf32> to vector<8x4xf32>
    %44 = arith.mulf %35, %43 : vector<8x4xf32>
    %c0_26 = arith.constant 0 : index
    %c0_27 = arith.constant 0 : index
    %45 = vector.load %arg10[%c0_26, %c0_27] : memref<8x4xf32, #tpu.memory_space<vmem>>, vector<8x4xf32>
    tpu.vector_store %arg10[%c0_26, %c0_27], %44 {strides = array<i32>} : memref<8x4xf32, #tpu.memory_space<vmem>>, vector<8x4xf32>,
    return
  }
  func.func @transform_0(%arg0: i32) -> (i32, i32) {
    %c0_i32 = arith.constant 0 : i32
    %c0_i32_0 = arith.constant 0 : i32
    return %arg0, %c0_i32 : i32, i32
  }
  func.func @transform_1(%arg0: i32) -> (i32, i32) {
    %c0_i32 = arith.constant 0 : i32
    %c0_i32_0 = arith.constant 0 : i32
    %c0_i32_1 = arith.constant 0 : i32
    return %c0_i32, %c0_i32_0 : i32, i32
  }
  func.func @transform_2(%arg0: i32) -> (i32, i32) {
    %c0_i32 = arith.constant 0 : i32
    %c0_i32_0 = arith.constant 0 : i32
    %c0_i32_1 = arith.constant 0 : i32
    return %c0_i32, %c0_i32_0 : i32, i32
  }
  func.func @transform_3(%arg0: i32) -> (i32, i32) {
    %c0_i32 = arith.constant 0 : i32
    %c0_i32_0 = arith.constant 0 : i32
    %c0_i32_1 = arith.constant 0 : i32
    return %c0_i32, %c0_i32_0 : i32, i32
  }
  func.func @transform_4(%arg0: i32) -> (i32, i32) {
    %c0_i32 = arith.constant 0 : i32
    %c0_i32_0 = arith.constant 0 : i32
    %c0_i32_1 = arith.constant 0 : i32
    return %c0_i32, %c0_i32_0 : i32, i32
  }
  func.func @transform_5(%arg0: i32) -> (i32, i32) {
    %c0_i32 = arith.constant 0 : i32
    %c0_i32_0 = arith.constant 0 : i32
    %c0_i32_1 = arith.constant 0 : i32
    return %c0_i32, %c0_i32_0 : i32, i32
  }
  func.func @transform_6(%arg0: i32) -> (i32, i32) {
    %c0_i32 = arith.constant 0 : i32
    %c0_i32_0 = arith.constant 0 : i32
    %c0_i32_1 = arith.constant 0 : i32
    return %c0_i32, %c0_i32_0 : i32, i32
  }
  func.func @transform_7(%arg0: i32) -> (i32, i32) {
    %c0_i32 = arith.constant 0 : i32
    %c0_i32_0 = arith.constant 0 : i32
    %c0_i32_1 = arith.constant 0 : i32
    return %c0_i32, %c0_i32_0 : i32, i32
  }
  func.func @transform_8(%arg0: i32) -> (i32, i32) {
    %c0_i32 = arith.constant 0 : i32
    %c0_i32_0 = arith.constant 0 : i32
    %c0_i32_1 = arith.constant 0 : i32
    return %c0_i32, %c0_i32_0 : i32, i32
  }
  func.func @transform_9(%arg0: i32) -> (i32, i32) {
    %c0_i32 = arith.constant 0 : i32
    %c0_i32_0 = arith.constant 0 : i32
    return %arg0, %c0_i32 : i32, i32
  }
}

module attributes {stable_mosaic.version = 11 : i64} {
  func.func @actor_kernel(%arg0: i32, %arg1: memref<8x32xf32, #tpu.memory_space<vmem>>, %arg2: memref<32x512xbf16, #tpu.memory_space<vmem>>, %arg3: memref<1x512xf32, #tpu.memory_space<vmem>>, %arg4: memref<512x256xbf16, #tpu.memory_space<vmem>>, %arg5: memref<1x256xf32, #tpu.memory_space<vmem>>, %arg6: memref<256x64xbf16, #tpu.memory_space<vmem>>, %arg7: memref<1x64xf32, #tpu.memory_space<vmem>>, %arg8: memref<64x4xbf16, #tpu.memory_space<vmem>>, %arg9: memref<1x4xf32, #tpu.memory_space<vmem>>, %arg10: memref<8x4xf32, #tpu.memory_space<vmem>>) attributes {dimension_semantics = [#tpu.dimension_semantics<parallel>], iteration_bounds = array<i64: 1>, scalar_prefetch = 0 : i64, scratch_operands = 0 : i64, tpu.core_type = #tpu.core_type<tc>, window_params = [{transform_indices = @transform_0, window_bounds = array<i64: 8, 32>}, {pipeline_mode = #tpu.pipeline_mode<synchronous>, transform_indices = @transform_1, window_bounds = array<i64: 32, 512>}, {pipeline_mode = #tpu.pipeline_mode<synchronous>, transform_indices = @transform_2, window_bounds = array<i64: 1, 512>}, {pipeline_mode = #tpu.pipeline_mode<synchronous>, transform_indices = @transform_3, window_bounds = array<i64: 512, 256>}, {pipeline_mode = #tpu.pipeline_mode<synchronous>, transform_indices = @transform_4, window_bounds = array<i64: 1, 256>}, {pipeline_mode = #tpu.pipeline_mode<synchronous>, transform_indices = @transform_5, window_bounds = array<i64: 256, 64>}, {pipeline_mode = #tpu.pipeline_mode<synchronous>, transform_indices = @transform_6, window_bounds = array<i64: 1, 64>}, {pipeline_mode = #tpu.pipeline_mode<synchronous>, transform_indices = @transform_7, window_bounds = array<i64: 64, 4>}, {pipeline_mode = #tpu.pipeline_mode<synchronous>, transform_indices = @transform_8, window_bounds = array<i64: 1, 4>}, {transform_indices = @transform_9, window_bounds = array<i64: 8, 4>}]} {
    %c0 = arith.constant 0 : index
    %c0_0 = arith.constant 0 : index
    %0 = vector.load %arg1[%c0, %c0_0] : memref<8x32xf32, #tpu.memory_space<vmem>>, vector<8x32xf32>
    %1 = arith.truncf %0 : vector<8x32xf32> to vector<8x32xbf16>
    %c0_1 = arith.constant 0 : index
    %c0_2 = arith.constant 0 : index
    %2 = vector.load %arg2[%c0_1, %c0_2] : memref<32x512xbf16, #tpu.memory_space<vmem>>, vector<32x512xbf16>
    %cst = arith.constant dense<0.000000e+00> : vector<8x512xf32>
    %3 = tpu.matmul %1, %2, %cst {dimension_numbers = #tpu.dot_dimension_numbers<[1], [0], [0], [1], [0, 0, 1, 1], [], []>} : vector<8x32xbf16>, vector<32x512xbf16>, vector<8x512xf32> -> vector<8x512xf32>
    %c0_3 = arith.constant 0 : index
    %c0_4 = arith.constant 0 : index
    %4 = vector.load %arg3[%c0_3, %c0_4] : memref<1x512xf32, #tpu.memory_space<vmem>>, vector<1x512xf32>
    %5 = vector.broadcast %4 : vector<1x512xf32> to vector<8x512xf32>
    %6 = arith.addf %3, %5 : vector<8x512xf32>
    %cst_5 = arith.constant 0.000000e+00 : f32
    %7 = vector.broadcast %cst_5 : f32 to vector<8x512xf32>
    %8 = arith.maximumf %6, %7 : vector<8x512xf32>
    %9 = arith.truncf %8 : vector<8x512xf32> to vector<8x512xbf16>
    %c0_6 = arith.constant 0 : index
    %c0_7 = arith.constant 0 : index
    %10 = vector.load %arg4[%c0_6, %c0_7] : memref<512x256xbf16, #tpu.memory_space<vmem>>, vector<512x256xbf16>
    %cst_8 = arith.constant dense<0.000000e+00> : vector<8x256xf32>
    %11 = tpu.matmul %9, %10, %cst_8 {dimension_numbers = #tpu.dot_dimension_numbers<[1], [0], [0], [1], [0, 0, 1, 1], [], []>} : vector<8x512xbf16>, vector<512x256xbf16>, vector<8x256xf32> -> vector<8x256xf32>
    %c0_9 = arith.constant 0 : index
    %c0_10 = arith.constant 0 : index
    %12 = vector.load %arg5[%c0_9, %c0_10] : memref<1x256xf32, #tpu.memory_space<vmem>>, vector<1x256xf32>
    %13 = vector.broadcast %12 : vector<1x256xf32> to vector<8x256xf32>
    %14 = arith.addf %11, %13 : vector<8x256xf32>
    %cst_11 = arith.constant 0.000000e+00 : f32
    %15 = vector.broadcast %cst_11 : f32 to vector<8x256xf32>
    %16 = arith.maximumf %14, %15 : vector<8x256xf32>
    %17 = arith.truncf %16 : vector<8x256xf32> to vector<8x256xbf16>
    %c0_12 = arith.constant 0 : index
    %c0_13 = arith.constant 0 : index
    %18 = vector.load %arg6[%c0_12, %c0_13] : memref<256x64xbf16, #tpu.memory_space<vmem>>, vector<256x64xbf16>
    %cst_14 = arith.constant dense<0.000000e+00> : vector<8x64xf32>
    %19 = tpu.matmul %17, %18, %cst_14 {dimension_numbers = #tpu.dot_dimension_numbers<[1], [0], [0], [1], [0, 0, 1, 1], [], []>} : vector<8x256xbf16>, vector<256x64xbf16>, vector<8x64xf32> -> vector<8x64xf32>
    %c0_15 = arith.constant 0 : index
    %c0_16 = arith.constant 0 : index
    %20 = vector.load %arg7[%c0_15, %c0_16] : memref<1x64xf32, #tpu.memory_space<vmem>>, vector<1x64xf32>
    %21 = vector.broadcast %20 : vector<1x64xf32> to vector<8x64xf32>
    %22 = arith.addf %19, %21 : vector<8x64xf32>
    %cst_17 = arith.constant 0.000000e+00 : f32
    %23 = vector.broadcast %cst_17 : f32 to vector<8x64xf32>
    %24 = arith.maximumf %22, %23 : vector<8x64xf32>
    %25 = arith.truncf %24 : vector<8x64xf32> to vector<8x64xbf16>
    %c0_18 = arith.constant 0 : index
    %c0_19 = arith.constant 0 : index
    %26 = vector.load %arg8[%c0_18, %c0_19] : memref<64x4xbf16, #tpu.memory_space<vmem>>, vector<64x4xbf16>
    %cst_20 = arith.constant dense<0.000000e+00> : vector<8x4xf32>
    %27 = tpu.matmul %25, %26, %cst_20 {dimension_numbers = #tpu.dot_dimension_numbers<[1], [0], [0], [1], [0, 0, 1, 1], [], []>} : vector<8x64xbf16>, vector<64x4xbf16>, vector<8x4xf32> -> vector<8x4xf32>
    %c0_21 = arith.constant 0 : index
    %c0_22 = arith.constant 0 : index
    %28 = vector.load %arg9[%c0_21, %c0_22] : memref<1x4xf32, #tpu.memory_space<vmem>>, vector<1x4xf32>
    %29 = vector.broadcast %28 : vector<1x4xf32> to vector<8x4xf32>
    %30 = arith.addf %27, %29 : vector<8x4xf32>
    %cst_23 = arith.constant dense<0xFF800000> : vector<8xf32>
    %31 = vector.multi_reduction <maximumf>, %30, %cst_23 [1] : vector<8x4xf32> to vector<8xf32>
    %32 = vector.shape_cast %31 : vector<8xf32> to vector<8x1xf32>
    %33 = vector.broadcast %32 : vector<8x1xf32> to vector<8x4xf32>
    %34 = arith.subf %30, %33 : vector<8x4xf32>
    %35 = math.exp %34 : vector<8x4xf32>
    %cst_24 = arith.constant dense<0.000000e+00> : vector<8xf32>
    %36 = vector.multi_reduction <add>, %35, %cst_24 [1] : vector<8x4xf32> to vector<8xf32>
    %37 = vector.shape_cast %36 : vector<8xf32> to vector<8x1xf32>
    %38 = tpu.reciprocal %37 {approx = true} : vector<8x1xf32> -> vector<8x1xf32>
    %39 = arith.mulf %37, %38 : vector<8x1xf32>
    %cst_25 = arith.constant 2.000000e+00 : f32
    %40 = vector.broadcast %cst_25 : f32 to vector<8x1xf32>
    %41 = arith.subf %40, %39 : vector<8x1xf32>
    %42 = arith.mulf %38, %41 : vector<8x1xf32>
    %43 = vector.broadcast %42 : vector<8x1xf32> to vector<8x4xf32>
    %44 = arith.mulf %35, %43 : vector<8x4xf32>
    %c0_26 = arith.constant 0 : index
    %c0_27 = arith.constant 0 : index
    %45 = vector.load %arg10[%c0_26, %c0_27] : memref<8x4xf32, #tpu.memory_space<vmem>>, vector<8x4xf32>
    tpu.vector_store %arg10[%c0_26, %c0_27], %44 {strides = array<i32>} : memref<8x4xf32, #tpu.memory_space<vmem>>, vector<8x4xf32>,
    return
  }
  func.func @transform_0(%arg0: i32) -> (i32, i32) {
    %c0_i32 = arith.constant 0 : i32
    %c0_i32_0 = arith.constant 0 : i32
    return %arg0, %c0_i32 : i32, i32
  }
  func.func @transform_1(%arg0: i32) -> (i32, i32) {
    %c0_i32 = arith.constant 0 : i32
    %c0_i32_0 = arith.constant 0 : i32
    %c0_i32_1 = arith.constant 0 : i32
    return %c0_i32, %c0_i32_0 : i32, i32
  }
  func.func @transform_2(%arg0: i32) -> (i32, i32) {
    %c0_i32 = arith.constant 0 : i32
    %c0_i32_0 = arith.constant 0 : i32
    %c0_i32_1 = arith.constant 0 : i32
    return %c0_i32, %c0_i32_0 : i32, i32
  }
  func.func @transform_3(%arg0: i32) -> (i32, i32) {
    %c0_i32 = arith.constant 0 : i32
    %c0_i32_0 = arith.constant 0 : i32
    %c0_i32_1 = arith.constant 0 : i32
    return %c0_i32, %c0_i32_0 : i32, i32
  }
  func.func @transform_4(%arg0: i32) -> (i32, i32) {
    %c0_i32 = arith.constant 0 : i32
    %c0_i32_0 = arith.constant 0 : i32
    %c0_i32_1 = arith.constant 0 : i32
    return %c0_i32, %c0_i32_0 : i32, i32
  }
  func.func @transform_5(%arg0: i32) -> (i32, i32) {
    %c0_i32 = arith.constant 0 : i32
    %c0_i32_0 = arith.constant 0 : i32
    %c0_i32_1 = arith.constant 0 : i32
    return %c0_i32, %c0_i32_0 : i32, i32
  }
  func.func @transform_6(%arg0: i32) -> (i32, i32) {
    %c0_i32 = arith.constant 0 : i32
    %c0_i32_0 = arith.constant 0 : i32
    %c0_i32_1 = arith.constant 0 : i32
    return %c0_i32, %c0_i32_0 : i32, i32
  }
  func.func @transform_7(%arg0: i32) -> (i32, i32) {
    %c0_i32 = arith.constant 0 : i32
    %c0_i32_0 = arith.constant 0 : i32
    %c0_i32_1 = arith.constant 0 : i32
    return %c0_i32, %c0_i32_0 : i32, i32
  }
  func.func @transform_8(%arg0: i32) -> (i32, i32) {
    %c0_i32 = arith.constant 0 : i32
    %c0_i32_0 = arith.constant 0 : i32
    %c0_i32_1 = arith.constant 0 : i32
    return %c0_i32, %c0_i32_0 : i32, i32
  }
  func.func @transform_9(%arg0: i32) -> (i32, i32) {
    %c0_i32 = arith.constant 0 : i32
    %c0_i32_0 = arith.constant 0 : i32
    return %arg0, %c0_i32 : i32, i32
  }
}

</mosaic_0001>

<bundles_post_ra>
// kernel: tpu_custom_call.1
= control target key start
LH: loop header
LB: loop body
LE: loop exit
PB: predicated region body
PF: predicated region fallthrough
CT: control target
= control target key end

     0   :  { %14 = vsyncpa [#allocation3], 0  ;;  %s1272_s30 = smov [#allocation2]   ;;  %s1452_s0 = inlined_call_operand.vmem [shape: f32[8,32], index: 0, kind: input, shape index: {}]   ;;  %s1453_s1 = inlined_call_operand.vmem [shape: bf16[32,512], index: 1, kind: input, shape index: {}]   ;;  %s1454_s2 = inlined_call_operand.vmem [shape: f32[1,512], index: 2, kind: input, shape index: {}]   ;;  %s1455_s3 = inlined_call_operand.hbm [shape: bf16[512,256], index: 3, kind: input, shape index: {}]   ;;  %s1456_s4 = inlined_call_operand.vmem [shape: f32[1,256], index: 4, kind: input, shape index: {}]   ;;  %s1457_s5 = inlined_call_operand.vmem [shape: bf16[256,64], index: 5, kind: input, shape index: {}]   ;;  %s1458_s6 = inlined_call_operand.vmem [shape: f32[1,64], index: 6, kind: input, shape index: {}]   ;;  %s1459_s7 = inlined_call_operand.vmem [shape: bf16[64,4], index: 7, kind: input, shape index: {}]   ;;  %s1460_s8 = inlined_call_operand.vmem [shape: f32[1,4], index: 8, kind: input, shape index: {}]   ;;  %s1461_s9 = inlined_call_operand.vmem [shape: f32[8,4], index: 9, kind: output, shape index: {}]  }
   0x1   :  { %s26_s10 = sshll.u32 %s1272_s30, 4  ;;  %s27_s10 = int_to_ptr.vmem [resolvable:$true] %s26_s10 }
   0x2   :  { %s1258_s11 = scalar_lea.vmem %s27_s10, 8192  ;;  %p1263_p1 = scmp.lt.s32.totalorder %s27_s10, %s27_s10 }
   0x3   :  { %p1259_p0 = scmp.ne.s32.totalorder %s27_s10, %s1258_s11  ;;  %p1264_p2 = scmp.lt.s32.totalorder %s1258_s11, %s1258_s11 }
   0x5   :  { %p1265_p3 = por %p1264_p2, %p1263_p1 }
   0x7   :  { %p1266_p4 = pnand %p1265_p3, %p1259_p0 }
   0x9   :  { %1269 = shalt.err (!%p1266_p4)
}
   0xa   :  { %s1273_s12 = smov 128   ;;  %s1274_s13 = smov 8  }
   0xb   :  { %32 = dma.hbm_to_vmem [thread:$0]  %s1455_s3, 8192, %s27_s10, [#allocation3], %s1273_s12, %s1273_s12, %s1274_s13  }
   0xc   :  { %1270 = dma.done.wait [#allocation3], 8192  }
   0xd   :  { %1271 = vsyncadd [#allocation3], 4294959104  ;;  %v1275_v0 = vmov 0   ;;  %v1118_v1 = vld [vmem:[%s1453_s1 + $0x24] ss:$16 sps:$4 sm:$0xff]   ;;  %vm119_vm0 = vcmask 261120  }
   0xe   :  { %155 = vmatprep.mubr.bf16.mxu1 %v1275_v0  ;;  %v1120_v2 = vld [vmem:[%s1453_s1 + $0x20] ss:$16 sps:$4 sm:$0xff]   ;;  %135 = vmatprep.subr.bf16.mxu1 %v1118_v1  ;;  %v1121_v3 = vld [vmem:[%s1453_s1 + $0x4] ss:$16 sps:$4 sm:$0xff]   ;;  %v1126_v6 = vld [vmem:[%s1453_s1 + $0x2c] ss:$16 sps:$4 sm:$0xff]  }
   0xf   :  { %v1123_v4 = vld [vmem:[%s1453_s1] ss:$16 sps:$4 sm:$0xff]   ;;  %136 = vmatpush1.bf16.msra.mxu1 %v1120_v2  ;;  %v1124_v7 = vld [vmem:[%s1453_s1 + $0x28] ss:$16 sps:$4 sm:$0xff]   ;;  %v1130_v9 = vld [vmem:[#allocation2 + $0x74] ss:$8 sps:$4 sm:$0xff]  }
  0x10   :  { %v47_v5 = vld [vmem:[%s1452_s0] sm:$0xff]  ;;  %137 = vmatprep.subr.bf16.mxu1 %v1121_v3  ;;  %v1132_v10 = vld [vmem:[#allocation2 + $0x70] ss:$8 sps:$4 sm:$0xff]   ;;  %v1129_v12 = vld [vmem:[%s1453_s1 + $0xc] ss:$16 sps:$4 sm:$0xff]   ;;  %609 = vmatprep.subr.bf16.mxu0 %v1130_v9  ;;  %vm1277_vm1 = vmmov 0  }
  0x11   :  { %v48_v8 = vpack.c.bf16 %v47_v5, %v47_v5  ;;  %v1133_v11 = vld [vmem:[#allocation2 + $0x64] ss:$8 sps:$4 sm:$0xff]   ;;  %610 = vmatpush1.bf16.msra.mxu0 %v1132_v10  ;;  %v1135_v13 = vld [vmem:[#allocation2 + $0x60] ss:$8 sps:$4 sm:$0xff]   ;;  %v1136_v14 = vld [vmem:[#allocation2 + $0x54] ss:$8 sps:$4 sm:$0xff]  }
  0x12   :  { %611 = vmatprep.subr.bf16.mxu0 %v1133_v11  ;;  %v1127_v15 = vld [vmem:[%s1453_s1 + $0x8] ss:$16 sps:$4 sm:$0xff]   ;;  %v1140_v16 = vld [vmem:[#allocation2 + $0x174] ss:$8 sps:$4 sm:$0xff]   ;;  %v1142_v18 = vld [vmem:[#allocation2 + $0x44] ss:$8 sps:$4 sm:$0xff]  }
  0x13   :  { %138 = vmatpush1.bf16.msra.mxu1 %v1123_v4  ;;  %v1141_v17 = vld [vmem:[#allocation2 + $0x50] ss:$8 sps:$4 sm:$0xff]   ;;  %v1146_v20 = vld [vmem:[#allocation2 + $0x164] ss:$8 sps:$4 sm:$0xff]   ;;  %v1147_v21 = vld [vmem:[#allocation2 + $0x40] ss:$8 sps:$4 sm:$0xff]  }
  0x14   :  { %176 = vmatprep.subr.bf16.mxu1 %v1126_v6  ;;  %v1138_v19 = vld [vmem:[#allocation2 + $0x170] ss:$8 sps:$4 sm:$0xff]   ;;  %v1148_v22 = vld [vmem:[#allocation2 + $0x34] ss:$8 sps:$4 sm:$0xff]   ;;  %v1144_v23 = vld [vmem:[#allocation2 + $0x160] ss:$8 sps:$4 sm:$0xff]  }
  0x15   :  { %612 = vmatpush1.bf16.msra.mxu0 %v1135_v13  ;;  %v1152_v24 = vld [vmem:[#allocation2 + $0x154] ss:$8 sps:$4 sm:$0xff]   ;;  %v1153_v25 = vld [vmem:[#allocation2 + $0x30] ss:$8 sps:$4 sm:$0xff]   ;;  %v1154_v26 = vld [vmem:[#allocation2 + $0x24] ss:$8 sps:$4 sm:$0xff]  }
  0x16   :  { %984 = vmatmul.mubr.msk.bf16.vlgmr.msra.gmra.mxu1 %vm119_vm0, %v48_v8  ;;  %613 = vmatprep.subr.bf16.mxu0 %v1136_v14  ;;  %v1150_v27 = vld [vmem:[#allocation2 + $0x150] ss:$8 sps:$4 sm:$0xff]   ;;  %v1158_v28 = vld [vmem:[#allocation2 + $0x144] ss:$8 sps:$4 sm:$0xff]   ;;  %v1159_v29 = vld [vmem:[#allocation2 + $0x20] ss:$8 sps:$4 sm:$0xff]  }
  0x17   :  { %177 = vmatpush1.bf16.msra.mxu1 %v1124_v7  ;;  %196 = vmatprep.mubr.bf16.mxu1 %v1275_v0  ;;  %v1160_v30 = vld [vmem:[#allocation2 + $0x14] ss:$8 sps:$4 sm:$0xff]   ;;  %v1156_v31 = vld [vmem:[#allocation2 + $0x140] ss:$8 sps:$4 sm:$0xff]   ;;  %v1165_v33 = vld [vmem:[#allocation2 + $0x10] ss:$8 sps:$4 sm:$0xff]  }
  0x18   :  { %178 = vmatprep.subr.bf16.mxu1 %v1129_v12  ;;  %v1164_v32 = vld [vmem:[#allocation2 + $0x134] ss:$8 sps:$4 sm:$0xff]   ;;  %v1166_v34 = vld [vmem:[#allocation2 + $0x4] ss:$8 sps:$4 sm:$0xff]   ;;  %v1162_v35 = vld [vmem:[#allocation2 + $0x130] ss:$8 sps:$4 sm:$0xff]   ;;  %v59_v12 = vlaneseq }
  0x19   :  { %614 = vmatpush1.bf16.msra.mxu0 %v1141_v17  ;;  %v1170_v36 = vld [vmem:[#allocation2 + $0x124] ss:$8 sps:$4 sm:$0xff]   ;;  %v1171_v37 = vld [vmem:[#allocation2] ss:$8 sps:$4 sm:$0xff]   ;;  %v1172_v38 = vld [vmem:[#allocation2 + $0xf4] ss:$8 sps:$4 sm:$0xff]  }
  0x1a   :  { %615 = vmatprep.subr.bf16.mxu0 %v1142_v18  ;;  %v1168_v39 = vld [vmem:[#allocation2 + $0x120] ss:$8 sps:$4 sm:$0xff]   ;;  %v1176_v40 = vld [vmem:[#allocation2 + $0x114] ss:$8 sps:$4 sm:$0xff]   ;;  %v1177_v41 = vld [vmem:[#allocation2 + $0xf0] ss:$8 sps:$4 sm:$0xff]  }
  0x1b   :  { %179 = vmatpush1.bf16.msra.mxu1 %v1127_v15  ;;  %v1178_v42 = vld [vmem:[#allocation2 + $0xe4] ss:$8 sps:$4 sm:$0xff]   ;;  %v1174_v43 = vld [vmem:[#allocation2 + $0x110] ss:$8 sps:$4 sm:$0xff]   ;;  %v1183_v45 = vld [vmem:[#allocation2 + $0xe0] ss:$8 sps:$4 sm:$0xff]  }
  0x1c   :  { %650 = vmatprep.subr.bf16.mxu1 %v1140_v16  ;;  %v1182_v44 = vld [vmem:[#allocation2 + $0x104] ss:$8 sps:$4 sm:$0xff]   ;;  %v1184_v46 = vld [vmem:[#allocation2 + $0xd4] ss:$8 sps:$4 sm:$0xff]   ;;  %v1180_v47 = vld [vmem:[#allocation2 + $0x100] ss:$8 sps:$4 sm:$0xff]  }
  0x1d   :  { %616 = vmatpush1.bf16.msra.mxu0 %v1147_v21  ;;  %v1188_v48 = vld [vmem:[#allocation2 + $0x1f4] ss:$8 sps:$4 sm:$0xff]   ;;  %v1189_v49 = vld [vmem:[#allocation2 + $0xd0] ss:$8 sps:$4 sm:$0xff]   ;;  %v1190_v50 = vld [vmem:[#allocation2 + $0xc4] ss:$8 sps:$4 sm:$0xff]  }
  0x1e   :  { %985 = vmatmul.mubr.msk.bf16.vlgmr.msra.gmra.mxu1 %vm119_vm0, %v48_v8  ;;  %617 = vmatprep.subr.bf16.mxu0 %v1148_v22  ;;  %v1186_v51 = vld [vmem:[#allocation2 + $0x1f0] ss:$8 sps:$4 sm:$0xff]   ;;  %v1194_v52 = vld [vmem:[#allocation2 + $0x1e4] ss:$8 sps:$4 sm:$0xff]   ;;  %v1195_v53 = vld [vmem:[#allocation2 + $0xc0] ss:$8 sps:$4 sm:$0xff]  }
  0x1f   :  { %651 = vmatpush1.bf16.msra.mxu1 %v1138_v19  ;;  %v1196_v54 = vld [vmem:[#allocation2 + $0xb4] ss:$8 sps:$4 sm:$0xff]   ;;  %v1192_v55 = vld [vmem:[#allocation2 + $0x1e0] ss:$8 sps:$4 sm:$0xff]   ;;  %v1201_v57 = vld [vmem:[#allocation2 + $0xb0] ss:$8 sps:$4 sm:$0xff]  }
  0x20   :  { %652 = vmatprep.subr.bf16.mxu1 %v1146_v20  ;;  %v1200_v56 = vld [vmem:[#allocation2 + $0x1d4] ss:$8 sps:$4 sm:$0xff]   ;;  %v1202_v58 = vld [vmem:[#allocation2 + $0xa4] ss:$8 sps:$4 sm:$0xff]   ;;  %v1198_v59 = vld [vmem:[#allocation2 + $0x1d0] ss:$8 sps:$4 sm:$0xff]  }
  0x21   :  { %618 = vmatpush1.bf16.msra.mxu0 %v1153_v25  ;;  %v1206_v60 = vld [vmem:[#allocation2 + $0x1c4] ss:$8 sps:$4 sm:$0xff]   ;;  %v1207_v61 = vld [vmem:[#allocation2 + $0xa0] ss:$8 sps:$4 sm:$0xff]   ;;  %v1208_v63 = vld [vmem:[#allocation2 + $0x94] ss:$8 sps:$4 sm:$0xff]  }
  0x22   :  { %619 = vmatprep.subr.bf16.mxu0 %v1154_v26  ;;  %v1204_v62 = vld [vmem:[#allocation2 + $0x1c0] ss:$8 sps:$4 sm:$0xff]   ;;  %v1212_v0 = vld [vmem:[#allocation2 + $0x1b4] ss:$8 sps:$4 sm:$0xff]   ;;  %v1210_v1 = vld [vmem:[#allocation2 + $0x1b0] ss:$8 sps:$4 sm:$0xff]  }
  0x23   :  { %653 = vmatpush1.bf16.msra.mxu1 %v1144_v23  ;;  %v1213_v2 = vld [vmem:[#allocation2 + $0x90] ss:$8 sps:$4 sm:$0xff]   ;;  %v1214_v3 = vld [vmem:[#allocation2 + $0x84] ss:$8 sps:$4 sm:$0xff]   ;;  %v1216_v5 = vld [vmem:[#allocation2 + $0x1a0] ss:$8 sps:$4 sm:$0xff]  }
  0x24   :  { %654 = vmatprep.subr.bf16.mxu1 %v1152_v24  ;;  %v1218_v4 = vld [vmem:[#allocation2 + $0x1a4] ss:$8 sps:$4 sm:$0xff]   ;;  %v1219_v6 = vld [vmem:[#allocation2 + $0x80] ss:$8 sps:$4 sm:$0xff]   ;;  %v1222_v7 = vld [vmem:[#allocation2 + $0x194] ss:$8 sps:$4 sm:$0xff]  }
  0x25   :  { %620 = vmatpush1.bf16.msra.mxu0 %v1159_v29  ;;  %v1220_v8 = vld [vmem:[#allocation2 + $0x190] ss:$8 sps:$4 sm:$0xff]   ;;  %v1225_v9 = vld [vmem:[#allocation2 + $0x184] ss:$8 sps:$4 sm:$0xff]   ;;  %v1223_v10 = vld [vmem:[#allocation2 + $0x180] ss:$8 sps:$4 sm:$0xff]  }
  0x26   :  { %621 = vmatprep.subr.bf16.mxu0 %v1160_v30  ;;  %v1226_v11 = vld [vmem:[%s1457_s5 + $0x78] sm:$0xff]   ;;  %v1363_v13 = vshrl.u32 %v59_v12, 7  ;;  %v57_v15 = vld [vmem:[%s1454_s2] sm:$0xf]  ;;  %vm911_vm2 = vcmask 523264   ;;  %vm955_vm3 = vcmask 31744  }
  0x27   :  { %655 = vmatpush1.bf16.msra.mxu1 %v1150_v27 }
  0x28   :  { %656 = vmatprep.subr.bf16.mxu1 %v1158_v28  ;;  %v61_v14 = vsub.s32 0, %v1363_v13  ;;  %v65_v16 = vsub.s32 1, %v1363_v13  ;;  %v69_v21 = vsub.s32 2, %v1363_v13  ;;  %v73_v24 = vsub.s32 3, %v1363_v13  ;;  %v1243_v13 = vld [vmem:[%s1459_s7 + $0x10] sm:$0xff]  }
  0x29   :  { %622 = vmatpush1.bf16.msra.mxu0 %v1165_v33 }
  0x2a   :  { %623 = vmatprep.subr.bf16.mxu0 %v1166_v34  ;;  %v62_v17 = vrot.slane %v57_v15, %v61_v14  ;;  %v66_v18 = vrot.slane %v57_v15, %v65_v16  ;;  %v70_v27 = vrot.slane %v57_v15, %v69_v21 }
  0x2b   :  { %657 = vmatpush1.bf16.msra.mxu1 %v1156_v31  ;;  %v74_v31 = vrot.slane %v57_v15, %v73_v24 }
  0x2c   :  { %658 = vmatprep.subr.bf16.mxu1 %v1164_v32  ;;  %v1227_v32 = vld [vmem:[%s1457_s5 + $0x38] sm:$0xff]  }
  0x2d   :  { %624 = vmatpush1.bf16.msra.mxu0 %v1171_v37 }
  0x2e   :  { %625 = vmatprep.subr.bf16.mxu0 %v1172_v38 }
  0x2f   :  { %659 = vmatpush1.bf16.msra.mxu1 %v1162_v35  ;;  %v1228_v35 = vld [vmem:[%s1457_s5 + $0x70] sm:$0xff]  }
  0x30   :  { %660 = vmatprep.subr.bf16.mxu1 %v1170_v36 }
  0x31   :  { %626 = vmatpush2.bf16.msra.mxu0 %v1177_v41 }
  0x32   :  { %627 = vmatprep.subr.bf16.mxu0 %v1178_v42  ;;  %v1230_v42 = vld [vmem:[%s1457_s5 + $0x68] sm:$0xff]  }
  0x33   :  { %661 = vmatpush1.bf16.msra.mxu1 %v1168_v39  ;;  %v1229_v39 = vld [vmem:[%s1457_s5 + $0x30] sm:$0xff]  }
  0x34   :  { %662 = vmatprep.subr.bf16.mxu1 %v1176_v40 }
  0x35   :  { %628 = vmatpush2.bf16.msra.mxu0 %v1183_v45 }
  0x36   :  { %629 = vmatprep.subr.bf16.mxu0 %v1184_v46  ;;  %v1231_v46 = vld [vmem:[%s1457_s5 + $0x28] sm:$0xff]  }
  0x37   :  { %663 = vmatpush1.bf16.msra.mxu1 %v1174_v43 }
  0x38   :  { %664 = vmatprep.subr.bf16.mxu1 %v1182_v44 }
  0x39   :  { %630 = vmatpush2.bf16.msra.mxu0 %v1189_v49  ;;  %v1233_v49 = vld [vmem:[%s1457_s5 + $0x20] sm:$0xff]  }
  0x3a   :  { %631 = vmatprep.subr.bf16.mxu0 %v1190_v50  ;;  %v1234_v50 = vld [vmem:[%s1457_s5 + $0x58] sm:$0xff]  }
  0x3b   :  { %665 = vmatpush1.bf16.msra.mxu1 %v1180_v47 }
  0x3c   :  { %666 = vmatprep.subr.bf16.mxu1 %v1188_v48  ;;  %v1232_v48 = vld [vmem:[%s1457_s5 + $0x60] sm:$0xff]  }
  0x3d   :  { %632 = vmatpush2.bf16.msra.mxu0 %v1195_v53  ;;  %v1237_v53 = vld [vmem:[%s1457_s5 + $0x10] sm:$0xff]  }
  0x3e   :  { %633 = vmatprep.subr.bf16.mxu0 %v1196_v54  ;;  %v1238_v54 = vld [vmem:[%s1457_s5 + $0x48] sm:$0xff]  }
  0x3f   :  { %667 = vmatpush2.bf16.msra.mxu1 %v1186_v51  ;;  %v1235_v51 = vld [vmem:[%s1457_s5 + $0x18] sm:$0xff]  }
  0x40   :  { %668 = vmatprep.subr.bf16.mxu1 %v1194_v52  ;;  %v1236_v52 = vld [vmem:[%s1457_s5 + $0x50] sm:$0xff]  }
  0x41   :  { %634 = vmatpush2.bf16.msra.mxu0 %v1201_v57  ;;  %v1241_v57 = vld [vmem:[%s1457_s5] sm:$0xff]  }
  0x42   :  { %635 = vmatprep.subr.bf16.mxu0 %v1202_v58  ;;  %v1242_v58 = vld [vmem:[%s1459_s7 + $0x18] sm:$0xff]  }
  0x43   :  { %669 = vmatpush2.bf16.msra.mxu1 %v1192_v55  ;;  %v1239_v55 = vld [vmem:[%s1457_s5 + $0x8] sm:$0xff]  }
  0x44   :  { %670 = vmatprep.subr.bf16.mxu1 %v1200_v56  ;;  %v1240_v56 = vld [vmem:[%s1457_s5 + $0x40] sm:$0xff]  }
  0x45   :  { %636 = vmatpush2.bf16.msra.mxu0 %v1207_v61 }
  0x46   :  { %637 = vmatprep.subr.bf16.mxu0 %v1208_v63 }
  0x47   :  { %671 = vmatpush2.bf16.msra.mxu1 %v1198_v59  ;;  %v1276_v59 = vmov 0.0  }
  0x48   :  { %672 = vmatprep.subr.bf16.mxu1 %v1206_v60  ;;  %v277_v60 = vld [vmem:[%s1456_s4] sm:$0x3] }
  0x49   :  { %638 = vmatpush2.bf16.msra.mxu0 %v1213_v2  ;;  %v282_v63 = vrot.slane %v277_v60, %v61_v14  ;;  %v1244_v14 = vld [vmem:[%s1459_s7 + $0x8] sm:$0xff]  }
  0x4a   :  { %639 = vmatprep.subr.bf16.mxu0 %v1214_v3 }
  0x4b   :  { %673 = vmatpush2.bf16.msra.mxu1 %v1204_v62 }
  0x4c   :  { %674 = vmatprep.subr.bf16.mxu1 %v1212_v0 }
  0x4d   :  { %640 = vmatpush2.bf16.msra.mxu0 %v1219_v6 }
  0x4e   :  { %1073 = vmatprep.subr.bf16.mxu0 %v1226_v11 }
  0x4f   :  { %675 = vmatpush2.bf16.msra.mxu1 %v1210_v1  ;;  %v286_v1 = vrot.slane %v277_v60, %v65_v16  ;;  %v1245_v16 = vld [vmem:[%s1459_s7] sm:$0xff]  }
  0x50   :  { %676 = vmatprep.subr.bf16.mxu1 %v1218_v4 }
  0x53   :  { %677 = vmatpush2.bf16.msra.mxu1 %v1216_v5 }
  0x54   :  { %678 = vmatprep.subr.bf16.mxu1 %v1222_v7 }
  0x57   :  { %679 = vmatpush2.bf16.msra.mxu1 %v1220_v8 }
  0x58   :  { %680 = vmatprep.subr.bf16.mxu1 %v1225_v9 }
  0x5b   :  { %681 = vmatpush2.bf16.msra.mxu1 %v1223_v10 }
  0x5c   :  { %1100 = vmatprep.subr.bf16.mxu1 %v1276_v59 }
  0xd6   :  { %v157_v19 = vpop.f32.mrf.mxu1 }
  0xd7   :  { %v158_v20 = vadd.f32 %v157_v19, %v62_v17  ;;  %v1050_v19 = vld [vmem:[%s1458_s6] ss:$0 sm:$0xff] }
  0xd8   :  { %v159_v22 = vpop.f32.mrf.mxu1 }
  0xd9   :  { %v160_v23 = vadd.f32 %v159_v22, %v66_v18  ;;  %v205_v25 = vmax.f32 %v158_v20, 0.0 }
  0xda   :  { %v161_v26 = vpop.f32.mrf.mxu1 }
  0xdb   :  { %v206_v28 = vmax.f32 %v160_v23, 0.0  ;;  %v209_v33 = vpack.c.bf16 %v205_v25, %v205_v25 }
  0xdc   :  { %v162_v29 = vpop.f32.mrf.mxu1 }
  0xdd   :  { %v210_v30 = vpack.c.bf16 %v206_v28, %v206_v28 }
  0xde   :  { %v198_v34 = vpop.f32.mrf.mxu1 }
  0xdf   :  { %v199_v36 = vadd.f32 %v198_v34, %v70_v27  ;;  %641 = vmatprep.mubr.bf16.mxu0 %v210_v30  ;;  %v1067_v27 = vld [vmem:[%s1460_s8] ss:$0 sm:$0xff] }
  0xe0   :  { %v200_v37 = vpop.f32.mrf.mxu1  ;;  %642 = vmatmul.mubr.bf16.vlgmr.msra.gmra.mxu0 %v209_v33 }
  0xe1   :  { %v201_v38 = vadd.f32 %v200_v37, %v74_v31  ;;  %1074 = vmatpush3.bf16.msra.mxu0 %v1227_v32  ;;  %v207_v40 = vmax.f32 %v199_v36, 0.0 }
  0xe2   :  { %v202_v41 = vpop.f32.mrf.mxu1  ;;  %1075 = vmatprep.subr.bf16.mxu0 %v1228_v35 }
  0xe3   :  { %v208_v43 = vmax.f32 %v201_v38, 0.0  ;;  %v211_v47 = vpack.c.bf16 %v207_v40, %v207_v40 }
  0xe4   :  { %v203_v44 = vpop.f32.mrf.mxu1 }
  0xe5   :  { %v212_v45 = vpack.c.bf16 %v208_v43, %v208_v43  ;;  %1076 = vmatpush3.bf16.msra.mxu0 %v1229_v39 }
  0xe6   :  { %1077 = vmatprep.subr.bf16.mxu0 %v1230_v42 }
  0xe7   :  { %682 = vmatprep.mubr.bf16.mxu1 %v212_v45 }
  0xe8   :  { %683 = vmatmul.mubr.bf16.vlgmr.msra.gmra.mxu1 %v211_v47 }
  0xe9   :  { %1078 = vmatpush3.bf16.msra.mxu0 %v1231_v46  ;;  %1101 = vmatpush3.bf16.msra.mxu1 %v1242_v58 }
  0xea   :  { %1079 = vmatprep.subr.bf16.mxu0 %v1232_v48  ;;  %1102 = vmatprep.subr.bf16.mxu1 %v1276_v59 }
  0xeb   :  { %1108 = vmatprep.mubr.msk.bf16.mxu1 %vm1277_vm1, %v1276_v59 }
  0xed   :  { %1080 = vmatpush3.bf16.msra.mxu0 %v1233_v49  ;;  %1103 = vmatpush3.bf16.msra.mxu1 %v1243_v13 }
  0xee   :  { %1081 = vmatprep.subr.bf16.mxu0 %v1234_v50  ;;  %1104 = vmatprep.subr.bf16.mxu1 %v1276_v59 }
  0xf1   :  { %1082 = vmatpush3.bf16.msra.mxu0 %v1235_v51  ;;  %1105 = vmatpush3.bf16.msra.mxu1 %v1244_v14 }
  0xf2   :  { %1083 = vmatprep.subr.bf16.mxu0 %v1236_v52  ;;  %1106 = vmatprep.subr.bf16.mxu1 %v1276_v59 }
  0xf5   :  { %1084 = vmatpush3.bf16.msra.mxu0 %v1237_v53  ;;  %1107 = vmatpush3.bf16.msra.mxu1 %v1245_v16 }
  0xf6   :  { %1085 = vmatprep.subr.bf16.mxu0 %v1238_v54 }
  0xf9   :  { %1086 = vmatpush3.bf16.msra.mxu0 %v1239_v55 }
  0xfa   :  { %1087 = vmatprep.subr.bf16.mxu0 %v1240_v56 }
  0xfd   :  { %1088 = vmatpush3.bf16.msra.mxu0 %v1241_v57 }
 0x1a0   :  { %v643_v61 = vpop.f32.mrf.mxu0 }
 0x1a1   :  { %v644_v3 = vadd.f32 %v643_v61, %v282_v63 }
 0x1a2   :  { %v645_v62 = vpop.f32.mrf.mxu0 }
 0x1a3   :  { %v646_v5 = vadd.f32 %v645_v62, %v286_v1 }
 0x1a4   :  { %v647_v0 = vpop.f32.mrf.mxu0 }
 0x1a6   :  { %v648_v2 = vpop.f32.mrf.mxu0 }
 0x1a8   :  { %v684_v4 = vpop.f32.mrf.mxu1 }
 0x1a9   :  { %v685_v6 = vadd.f32 %v684_v4, %v644_v3 }
 0x1aa   :  { %v686_v7 = vpop.f32.mrf.mxu1 }
 0x1ab   :  { %v687_v8 = vadd.f32 %v686_v7, %v646_v5  ;;  %v691_v9 = vmax.f32 %v685_v6, 0.0 }
 0x1ac   :  { %v688_v10 = vpop.f32.mrf.mxu1 }
 0x1ad   :  { %v692_v11 = vmax.f32 %v687_v8, 0.0  ;;  %v693_v17 = vpack.c.bf16 %v691_v9, %v691_v9 }
 0x1ae   :  { %v689_v12 = vpop.f32.mrf.mxu1 }
 0x1af   :  { %v694_v15 = vpack.c.bf16 %v692_v11, %v692_v11 }
 0x1b1   :  { %862 = vmatprep.mubr.bf16.mxu0 %v694_v15 }
 0x1b2   :  { %863 = vmatmul.mubr.bf16.vlgmr.msra.gmra.mxu0 %v693_v17 }
 0x272   :  { %v1089_v18 = vpop.f32.mrf.mxu0 }
 0x274   :  { %v1090_v20 = vpop.f32.mrf.mxu0 }
 0x275   :  { %v1091_v21 = vadd.f32 %v1090_v20, %v1089_v18 }
 0x276   :  { %v1092_v22 = vpop.f32.mrf.mxu0 }
 0x277   :  { %v865_v23 = vadd.f32 %v1091_v21, %v1050_v19 }
 0x278   :  { %v1093_v24 = vpop.f32.mrf.mxu0 }
 0x279   :  { %v870_v25 = vmax.f32 %v865_v23, 0.0 }
 0x27b   :  { %v871_v26 = vpack.c.bf16 %v870_v25, %v870_v25 }
 0x27d   :  { %1109 = vmatmul.mubr.msk.bf16.vlgmr.msra.gmra.mxu1 %vm911_vm2, %v871_v26 }
 0x33d   :  { %v949_v28 = vpop.f32.mrf.mxu1 }
 0x33e   :  { %v950_v29 = vadd.f32 %v1067_v27, %v949_v28 }
 0x33f   :  { %v1110_v30 = vpop.f32.mrf.mxu1 }
 0x340   :  { %v956_v31 = vsel %vm955_vm3, %v950_v29, -inf }
 0x341   :  { %957 = vmax.xlane.f32.xlu0 %v956_v31  ;;  %v952_v32 = vpop.f32.mrf.mxu1 }
 0x343   :  { %v1111_v33 = vpop.f32.mrf.mxu1 }
 0x3ca   :  { %v958_v34 = vpop.xlane.xlu0 %957 }
 0x3cb   :  { %v959_v35 = vsub.f32 %v950_v29, %v958_v34 }
 0x3cd   :  { %v960_v36 = vmul.f32 1.442695, %v959_v35 }
 0x3cf   :  { %1246 = vpow2.f32 %v960_v36 }
 0x3dc   :  { %v1247_v37 = vpop.eup %1246 }
 0x3dd   :  { %v962_v38 = vsel %vm955_vm3, %v1247_v37, 0.0 }
 0x3de   :  { %963 = vadd.xlane.f32.xlu0 %v962_v38 }
 0x467   :  { %v964_v39 = vpop.xlane.xlu0 %963 }
 0x468   :  { %1248 = vrcp.f32 %v964_v39 }
 0x475   :  { %v1249_v40 = vpop.eup %1248 }
 0x476   :  { %v966_v41 = vmul.f32 %v1249_v40, %v964_v39 }
 0x478   :  { %v967_v42 = vsub.f32 2.0, %v966_v41 }
 0x47a   :  { %v968_v43 = vmul.f32 %v1249_v40, %v967_v42 }
 0x47c   :  { %v969_v44 = vmul.f32 %v1247_v37, %v968_v43 }
 0x47e   :  { %970 = vst.msk [vmem:[%s1461_s9] sm:$0xff] %vm955_vm3, %v969_v44 }
 0x47f   :  { %975 = vsyncpa [#allocation3], 1 }

// kernel: tpu_custom_call.1
= control target key start
LH: loop header
LB: loop body
LE: loop exit
PB: predicated region body
PF: predicated region fallthrough
CT: control target
= control target key end

     0   :  { %14 = vsyncpa [#allocation3], 0  ;;  %s1272_s30 = smov [#allocation2]   ;;  %s1452_s0 = inlined_call_operand.vmem [shape: f32[8,32], index: 0, kind: input, shape index: {}]   ;;  %s1453_s1 = inlined_call_operand.vmem [shape: bf16[32,512], index: 1, kind: input, shape index: {}]   ;;  %s1454_s2 = inlined_call_operand.vmem [shape: f32[1,512], index: 2, kind: input, shape index: {}]   ;;  %s1455_s3 = inlined_call_operand.hbm [shape: bf16[512,256], index: 3, kind: input, shape index: {}]   ;;  %s1456_s4 = inlined_call_operand.vmem [shape: f32[1,256], index: 4, kind: input, shape index: {}]   ;;  %s1457_s5 = inlined_call_operand.vmem [shape: bf16[256,64], index: 5, kind: input, shape index: {}]   ;;  %s1458_s6 = inlined_call_operand.vmem [shape: f32[1,64], index: 6, kind: input, shape index: {}]   ;;  %s1459_s7 = inlined_call_operand.vmem [shape: bf16[64,4], index: 7, kind: input, shape index: {}]   ;;  %s1460_s8 = inlined_call_operand.vmem [shape: f32[1,4], index: 8, kind: input, shape index: {}]   ;;  %s1461_s9 = inlined_call_operand.vmem [shape: f32[8,4], index: 9, kind: output, shape index: {}]  }
   0x1   :  { %s26_s10 = sshll.u32 %s1272_s30, 4  ;;  %s27_s10 = int_to_ptr.vmem [resolvable:$true] %s26_s10 }
   0x2   :  { %s1258_s11 = scalar_lea.vmem %s27_s10, 8192  ;;  %p1263_p1 = scmp.lt.s32.totalorder %s27_s10, %s27_s10 }
   0x3   :  { %p1259_p0 = scmp.ne.s32.totalorder %s27_s10, %s1258_s11  ;;  %p1264_p2 = scmp.lt.s32.totalorder %s1258_s11, %s1258_s11 }
   0x5   :  { %p1265_p3 = por %p1264_p2, %p1263_p1 }
   0x7   :  { %p1266_p4 = pnand %p1265_p3, %p1259_p0 }
   0x9   :  { %1269 = shalt.err (!%p1266_p4)
}
   0xa   :  { %s1273_s12 = smov 128   ;;  %s1274_s13 = smov 8  }
   0xb   :  { %32 = dma.hbm_to_vmem [thread:$0]  %s1455_s3, 8192, %s27_s10, [#allocation3], %s1273_s12, %s1273_s12, %s1274_s13  }
   0xc   :  { %1270 = dma.done.wait [#allocation3], 8192  }
   0xd   :  { %1271 = vsyncadd [#allocation3], 4294959104  ;;  %v1275_v0 = vmov 0   ;;  %v1118_v1 = vld [vmem:[%s1453_s1 + $0x24] ss:$16 sps:$4 sm:$0xff]   ;;  %vm119_vm0 = vcmask 261120  }
   0xe   :  { %155 = vmatprep.mubr.bf16.mxu1 %v1275_v0  ;;  %v1120_v2 = vld [vmem:[%s1453_s1 + $0x20] ss:$16 sps:$4 sm:$0xff]   ;;  %135 = vmatprep.subr.bf16.mxu1 %v1118_v1  ;;  %v1121_v3 = vld [vmem:[%s1453_s1 + $0x4] ss:$16 sps:$4 sm:$0xff]   ;;  %v1126_v6 = vld [vmem:[%s1453_s1 + $0x2c] ss:$16 sps:$4 sm:$0xff]  }
   0xf   :  { %v1123_v4 = vld [vmem:[%s1453_s1] ss:$16 sps:$4 sm:$0xff]   ;;  %136 = vmatpush1.bf16.msra.mxu1 %v1120_v2  ;;  %v1124_v7 = vld [vmem:[%s1453_s1 + $0x28] ss:$16 sps:$4 sm:$0xff]   ;;  %v1130_v9 = vld [vmem:[#allocation2 + $0x74] ss:$8 sps:$4 sm:$0xff]  }
  0x10   :  { %v47_v5 = vld [vmem:[%s1452_s0] sm:$0xff]  ;;  %137 = vmatprep.subr.bf16.mxu1 %v1121_v3  ;;  %v1132_v10 = vld [vmem:[#allocation2 + $0x70] ss:$8 sps:$4 sm:$0xff]   ;;  %v1129_v12 = vld [vmem:[%s1453_s1 + $0xc] ss:$16 sps:$4 sm:$0xff]   ;;  %609 = vmatprep.subr.bf16.mxu0 %v1130_v9  ;;  %vm1277_vm1 = vmmov 0  }
  0x11   :  { %v48_v8 = vpack.c.bf16 %v47_v5, %v47_v5  ;;  %v1133_v11 = vld [vmem:[#allocation2 + $0x64] ss:$8 sps:$4 sm:$0xff]   ;;  %610 = vmatpush1.bf16.msra.mxu0 %v1132_v10  ;;  %v1135_v13 = vld [vmem:[#allocation2 + $0x60] ss:$8 sps:$4 sm:$0xff]   ;;  %v1136_v14 = vld [vmem:[#allocation2 + $0x54] ss:$8 sps:$4 sm:$0xff]  }
  0x12   :  { %611 = vmatprep.subr.bf16.mxu0 %v1133_v11  ;;  %v1127_v15 = vld [vmem:[%s1453_s1 + $0x8] ss:$16 sps:$4 sm:$0xff]   ;;  %v1140_v16 = vld [vmem:[#allocation2 + $0x174] ss:$8 sps:$4 sm:$0xff]   ;;  %v1142_v18 = vld [vmem:[#allocation2 + $0x44] ss:$8 sps:$4 sm:$0xff]  }
  0x13   :  { %138 = vmatpush1.bf16.msra.mxu1 %v1123_v4  ;;  %v1141_v17 = vld [vmem:[#allocation2 + $0x50] ss:$8 sps:$4 sm:$0xff]   ;;  %v1146_v20 = vld [vmem:[#allocation2 + $0x164] ss:$8 sps:$4 sm:$0xff]   ;;  %v1147_v21 = vld [vmem:[#allocation2 + $0x40] ss:$8 sps:$4 sm:$0xff]  }
  0x14   :  { %176 = vmatprep.subr.bf16.mxu1 %v1126_v6  ;;  %v1138_v19 = vld [vmem:[#allocation2 + $0x170] ss:$8 sps:$4 sm:$0xff]   ;;  %v1148_v22 = vld [vmem:[#allocation2 + $0x34] ss:$8 sps:$4 sm:$0xff]   ;;  %v1144_v23 = vld [vmem:[#allocation2 + $0x160] ss:$8 sps:$4 sm:$0xff]  }
  0x15   :  { %612 = vmatpush1.bf16.msra.mxu0 %v1135_v13  ;;  %v1152_v24 = vld [vmem:[#allocation2 + $0x154] ss:$8 sps:$4 sm:$0xff]   ;;  %v1153_v25 = vld [vmem:[#allocation2 + $0x30] ss:$8 sps:$4 sm:$0xff]   ;;  %v1154_v26 = vld [vmem:[#allocation2 + $0x24] ss:$8 sps:$4 sm:$0xff]  }
  0x16   :  { %984 = vmatmul.mubr.msk.bf16.vlgmr.msra.gmra.mxu1 %vm119_vm0, %v48_v8  ;;  %613 = vmatprep.subr.bf16.mxu0 %v1136_v14  ;;  %v1150_v27 = vld [vmem:[#allocation2 + $0x150] ss:$8 sps:$4 sm:$0xff]   ;;  %v1158_v28 = vld [vmem:[#allocation2 + $0x144] ss:$8 sps:$4 sm:$0xff]   ;;  %v1159_v29 = vld [vmem:[#allocation2 + $0x20] ss:$8 sps:$4 sm:$0xff]  }
  0x17   :  { %177 = vmatpush1.bf16.msra.mxu1 %v1124_v7  ;;  %196 = vmatprep.mubr.bf16.mxu1 %v1275_v0  ;;  %v1160_v30 = vld [vmem:[#allocation2 + $0x14] ss:$8 sps:$4 sm:$0xff]   ;;  %v1156_v31 = vld [vmem:[#allocation2 + $0x140] ss:$8 sps:$4 sm:$0xff]   ;;  %v1165_v33 = vld [vmem:[#allocation2 + $0x10] ss:$8 sps:$4 sm:$0xff]  }
  0x18   :  { %178 = vmatprep.subr.bf16.mxu1 %v1129_v12  ;;  %v1164_v32 = vld [vmem:[#allocation2 + $0x134] ss:$8 sps:$4 sm:$0xff]   ;;  %v1166_v34 = vld [vmem:[#allocation2 + $0x4] ss:$8 sps:$4 sm:$0xff]   ;;  %v1162_v35 = vld [vmem:[#allocation2 + $0x130] ss:$8 sps:$4 sm:$0xff]   ;;  %v59_v12 = vlaneseq }
  0x19   :  { %614 = vmatpush1.bf16.msra.mxu0 %v1141_v17  ;;  %v1170_v36 = vld [vmem:[#allocation2 + $0x124] ss:$8 sps:$4 sm:$0xff]   ;;  %v1171_v37 = vld [vmem:[#allocation2] ss:$8 sps:$4 sm:$0xff]   ;;  %v1172_v38 = vld [vmem:[#allocation2 + $0xf4] ss:$8 sps:$4 sm:$0xff]  }
  0x1a   :  { %615 = vmatprep.subr.bf16.mxu0 %v1142_v18  ;;  %v1168_v39 = vld [vmem:[#allocation2 + $0x120] ss:$8 sps:$4 sm:$0xff]   ;;  %v1176_v40 = vld [vmem:[#allocation2 + $0x114] ss:$8 sps:$4 sm:$0xff]   ;;  %v1177_v41 = vld [vmem:[#allocation2 + $0xf0] ss:$8 sps:$4 sm:$0xff]  }
  0x1b   :  { %179 = vmatpush1.bf16.msra.mxu1 %v1127_v15  ;;  %v1178_v42 = vld [vmem:[#allocation2 + $0xe4] ss:$8 sps:$4 sm:$0xff]   ;;  %v1174_v43 = vld [vmem:[#allocation2 + $0x110] ss:$8 sps:$4 sm:$0xff]   ;;  %v1183_v45 = vld [vmem:[#allocation2 + $0xe0] ss:$8 sps:$4 sm:$0xff]  }
  0x1c   :  { %650 = vmatprep.subr.bf16.mxu1 %v1140_v16  ;;  %v1182_v44 = vld [vmem:[#allocation2 + $0x104] ss:$8 sps:$4 sm:$0xff]   ;;  %v1184_v46 = vld [vmem:[#allocation2 + $0xd4] ss:$8 sps:$4 sm:$0xff]   ;;  %v1180_v47 = vld [vmem:[#allocation2 + $0x100] ss:$8 sps:$4 sm:$0xff]  }
  0x1d   :  { %616 = vmatpush1.bf16.msra.mxu0 %v1147_v21  ;;  %v1188_v48 = vld [vmem:[#allocation2 + $0x1f4] ss:$8 sps:$4 sm:$0xff]   ;;  %v1189_v49 = vld [vmem:[#allocation2 + $0xd0] ss:$8 sps:$4 sm:$0xff]   ;;  %v1190_v50 = vld [vmem:[#allocation2 + $0xc4] ss:$8 sps:$4 sm:$0xff]  }
  0x1e   :  { %985 = vmatmul.mubr.msk.bf16.vlgmr.msra.gmra.mxu1 %vm119_vm0, %v48_v8  ;;  %617 = vmatprep.subr.bf16.mxu0 %v1148_v22  ;;  %v1186_v51 = vld [vmem:[#allocation2 + $0x1f0] ss:$8 sps:$4 sm:$0xff]   ;;  %v1194_v52 = vld [vmem:[#allocation2 + $0x1e4] ss:$8 sps:$4 sm:$0xff]   ;;  %v1195_v53 = vld [vmem:[#allocation2 + $0xc0] ss:$8 sps:$4 sm:$0xff]  }
  0x1f   :  { %651 = vmatpush1.bf16.msra.mxu1 %v1138_v19  ;;  %v1196_v54 = vld [vmem:[#allocation2 + $0xb4] ss:$8 sps:$4 sm:$0xff]   ;;  %v1192_v55 = vld [vmem:[#allocation2 + $0x1e0] ss:$8 sps:$4 sm:$0xff]   ;;  %v1201_v57 = vld [vmem:[#allocation2 + $0xb0] ss:$8 sps:$4 sm:$0xff]  }
  0x20   :  { %652 = vmatprep.subr.bf16.mxu1 %v1146_v20  ;;  %v1200_v56 = vld [vmem:[#allocation2 + $0x1d4] ss:$8 sps:$4 sm:$0xff]   ;;  %v1202_v58 = vld [vmem:[#allocation2 + $0xa4] ss:$8 sps:$4 sm:$0xff]   ;;  %v1198_v59 = vld [vmem:[#allocation2 + $0x1d0] ss:$8 sps:$4 sm:$0xff]  }
  0x21   :  { %618 = vmatpush1.bf16.msra.mxu0 %v1153_v25  ;;  %v1206_v60 = vld [vmem:[#allocation2 + $0x1c4] ss:$8 sps:$4 sm:$0xff]   ;;  %v1207_v61 = vld [vmem:[#allocation2 + $0xa0] ss:$8 sps:$4 sm:$0xff]   ;;  %v1208_v63 = vld [vmem:[#allocation2 + $0x94] ss:$8 sps:$4 sm:$0xff]  }
  0x22   :  { %619 = vmatprep.subr.bf16.mxu0 %v1154_v26  ;;  %v1204_v62 = vld [vmem:[#allocation2 + $0x1c0] ss:$8 sps:$4 sm:$0xff]   ;;  %v1212_v0 = vld [vmem:[#allocation2 + $0x1b4] ss:$8 sps:$4 sm:$0xff]   ;;  %v1210_v1 = vld [vmem:[#allocation2 + $0x1b0] ss:$8 sps:$4 sm:$0xff]  }
  0x23   :  { %653 = vmatpush1.bf16.msra.mxu1 %v1144_v23  ;;  %v1213_v2 = vld [vmem:[#allocation2 + $0x90] ss:$8 sps:$4 sm:$0xff]   ;;  %v1214_v3 = vld [vmem:[#allocation2 + $0x84] ss:$8 sps:$4 sm:$0xff]   ;;  %v1216_v5 = vld [vmem:[#allocation2 + $0x1a0] ss:$8 sps:$4 sm:$0xff]  }
  0x24   :  { %654 = vmatprep.subr.bf16.mxu1 %v1152_v24  ;;  %v1218_v4 = vld [vmem:[#allocation2 + $0x1a4] ss:$8 sps:$4 sm:$0xff]   ;;  %v1219_v6 = vld [vmem:[#allocation2 + $0x80] ss:$8 sps:$4 sm:$0xff]   ;;  %v1222_v7 = vld [vmem:[#allocation2 + $0x194] ss:$8 sps:$4 sm:$0xff]  }
  0x25   :  { %620 = vmatpush1.bf16.msra.mxu0 %v1159_v29  ;;  %v1220_v8 = vld [vmem:[#allocation2 + $0x190] ss:$8 sps:$4 sm:$0xff]   ;;  %v1225_v9 = vld [vmem:[#allocation2 + $0x184] ss:$8 sps:$4 sm:$0xff]   ;;  %v1223_v10 = vld [vmem:[#allocation2 + $0x180] ss:$8 sps:$4 sm:$0xff]  }
  0x26   :  { %621 = vmatprep.subr.bf16.mxu0 %v1160_v30  ;;  %v1226_v11 = vld [vmem:[%s1457_s5 + $0x78] sm:$0xff]   ;;  %v1363_v13 = vshrl.u32 %v59_v12, 7  ;;  %v57_v15 = vld [vmem:[%s1454_s2] sm:$0xf]  ;;  %vm911_vm2 = vcmask 523264   ;;  %vm955_vm3 = vcmask 31744  }
  0x27   :  { %655 = vmatpush1.bf16.msra.mxu1 %v1150_v27 }
  0x28   :  { %656 = vmatprep.subr.bf16.mxu1 %v1158_v28  ;;  %v61_v14 = vsub.s32 0, %v1363_v13  ;;  %v65_v16 = vsub.s32 1, %v1363_v13  ;;  %v69_v21 = vsub.s32 2, %v1363_v13  ;;  %v73_v24 = vsub.s32 3, %v1363_v13  ;;  %v1243_v13 = vld [vmem:[%s1459_s7 + $0x10] sm:$0xff]  }
  0x29   :  { %622 = vmatpush1.bf16.msra.mxu0 %v1165_v33 }
  0x2a   :  { %623 = vmatprep.subr.bf16.mxu0 %v1166_v34  ;;  %v62_v17 = vrot.slane %v57_v15, %v61_v14  ;;  %v66_v18 = vrot.slane %v57_v15, %v65_v16  ;;  %v70_v27 = vrot.slane %v57_v15, %v69_v21 }
  0x2b   :  { %657 = vmatpush1.bf16.msra.mxu1 %v1156_v31  ;;  %v74_v31 = vrot.slane %v57_v15, %v73_v24 }
  0x2c   :  { %658 = vmatprep.subr.bf16.mxu1 %v1164_v32  ;;  %v1227_v32 = vld [vmem:[%s1457_s5 + $0x38] sm:$0xff]  }
  0x2d   :  { %624 = vmatpush1.bf16.msra.mxu0 %v1171_v37 }
  0x2e   :  { %625 = vmatprep.subr.bf16.mxu0 %v1172_v38 }
  0x2f   :  { %659 = vmatpush1.bf16.msra.mxu1 %v1162_v35  ;;  %v1228_v35 = vld [vmem:[%s1457_s5 + $0x70] sm:$0xff]  }
  0x30   :  { %660 = vmatprep.subr.bf16.mxu1 %v1170_v36 }
  0x31   :  { %626 = vmatpush2.bf16.msra.mxu0 %v1177_v41 }
  0x32   :  { %627 = vmatprep.subr.bf16.mxu0 %v1178_v42  ;;  %v1230_v42 = vld [vmem:[%s1457_s5 + $0x68] sm:$0xff]  }
  0x33   :  { %661 = vmatpush1.bf16.msra.mxu1 %v1168_v39  ;;  %v1229_v39 = vld [vmem:[%s1457_s5 + $0x30] sm:$0xff]  }
  0x34   :  { %662 = vmatprep.subr.bf16.mxu1 %v1176_v40 }
  0x35   :  { %628 = vmatpush2.bf16.msra.mxu0 %v1183_v45 }
  0x36   :  { %629 = vmatprep.subr.bf16.mxu0 %v1184_v46  ;;  %v1231_v46 = vld [vmem:[%s1457_s5 + $0x28] sm:$0xff]  }
  0x37   :  { %663 = vmatpush1.bf16.msra.mxu1 %v1174_v43 }
  0x38   :  { %664 = vmatprep.subr.bf16.mxu1 %v1182_v44 }
  0x39   :  { %630 = vmatpush2.bf16.msra.mxu0 %v1189_v49  ;;  %v1233_v49 = vld [vmem:[%s1457_s5 + $0x20] sm:$0xff]  }
  0x3a   :  { %631 = vmatprep.subr.bf16.mxu0 %v1190_v50  ;;  %v1234_v50 = vld [vmem:[%s1457_s5 + $0x58] sm:$0xff]  }
  0x3b   :  { %665 = vmatpush1.bf16.msra.mxu1 %v1180_v47 }
  0x3c   :  { %666 = vmatprep.subr.bf16.mxu1 %v1188_v48  ;;  %v1232_v48 = vld [vmem:[%s1457_s5 + $0x60] sm:$0xff]  }
  0x3d   :  { %632 = vmatpush2.bf16.msra.mxu0 %v1195_v53  ;;  %v1237_v53 = vld [vmem:[%s1457_s5 + $0x10] sm:$0xff]  }
  0x3e   :  { %633 = vmatprep.subr.bf16.mxu0 %v1196_v54  ;;  %v1238_v54 = vld [vmem:[%s1457_s5 + $0x48] sm:$0xff]  }
  0x3f   :  { %667 = vmatpush2.bf16.msra.mxu1 %v1186_v51  ;;  %v1235_v51 = vld [vmem:[%s1457_s5 + $0x18] sm:$0xff]  }
  0x40   :  { %668 = vmatprep.subr.bf16.mxu1 %v1194_v52  ;;  %v1236_v52 = vld [vmem:[%s1457_s5 + $0x50] sm:$0xff]  }
  0x41   :  { %634 = vmatpush2.bf16.msra.mxu0 %v1201_v57  ;;  %v1241_v57 = vld [vmem:[%s1457_s5] sm:$0xff]  }
  0x42   :  { %635 = vmatprep.subr.bf16.mxu0 %v1202_v58  ;;  %v1242_v58 = vld [vmem:[%s1459_s7 + $0x18] sm:$0xff]  }
  0x43   :  { %669 = vmatpush2.bf16.msra.mxu1 %v1192_v55  ;;  %v1239_v55 = vld [vmem:[%s1457_s5 + $0x8] sm:$0xff]  }
  0x44   :  { %670 = vmatprep.subr.bf16.mxu1 %v1200_v56  ;;  %v1240_v56 = vld [vmem:[%s1457_s5 + $0x40] sm:$0xff]  }
  0x45   :  { %636 = vmatpush2.bf16.msra.mxu0 %v1207_v61 }
  0x46   :  { %637 = vmatprep.subr.bf16.mxu0 %v1208_v63 }
  0x47   :  { %671 = vmatpush2.bf16.msra.mxu1 %v1198_v59  ;;  %v1276_v59 = vmov 0.0  }
  0x48   :  { %672 = vmatprep.subr.bf16.mxu1 %v1206_v60  ;;  %v277_v60 = vld [vmem:[%s1456_s4] sm:$0x3] }
  0x49   :  { %638 = vmatpush2.bf16.msra.mxu0 %v1213_v2  ;;  %v282_v63 = vrot.slane %v277_v60, %v61_v14  ;;  %v1244_v14 = vld [vmem:[%s1459_s7 + $0x8] sm:$0xff]  }
  0x4a   :  { %639 = vmatprep.subr.bf16.mxu0 %v1214_v3 }
  0x4b   :  { %673 = vmatpush2.bf16.msra.mxu1 %v1204_v62 }
  0x4c   :  { %674 = vmatprep.subr.bf16.mxu1 %v1212_v0 }
  0x4d   :  { %640 = vmatpush2.bf16.msra.mxu0 %v1219_v6 }
  0x4e   :  { %1073 = vmatprep.subr.bf16.mxu0 %v1226_v11 }
  0x4f   :  { %675 = vmatpush2.bf16.msra.mxu1 %v1210_v1  ;;  %v286_v1 = vrot.slane %v277_v60, %v65_v16  ;;  %v1245_v16 = vld [vmem:[%s1459_s7] sm:$0xff]  }
  0x50   :  { %676 = vmatprep.subr.bf16.mxu1 %v1218_v4 }
  0x53   :  { %677 = vmatpush2.bf16.msra.mxu1 %v1216_v5 }
  0x54   :  { %678 = vmatprep.subr.bf16.mxu1 %v1222_v7 }
  0x57   :  { %679 = vmatpush2.bf16.msra.mxu1 %v1220_v8 }
  0x58   :  { %680 = vmatprep.subr.bf16.mxu1 %v1225_v9 }
  0x5b   :  { %681 = vmatpush2.bf16.msra.mxu1 %v1223_v10 }
  0x5c   :  { %1100 = vmatprep.subr.bf16.mxu1 %v1276_v59 }
  0xd6   :  { %v157_v19 = vpop.f32.mrf.mxu1 }
  0xd7   :  { %v158_v20 = vadd.f32 %v157_v19, %v62_v17  ;;  %v1050_v19 = vld [vmem:[%s1458_s6] ss:$0 sm:$0xff] }
  0xd8   :  { %v159_v22 = vpop.f32.mrf.mxu1 }
  0xd9   :  { %v160_v23 = vadd.f32 %v159_v22, %v66_v18  ;;  %v205_v25 = vmax.f32 %v158_v20, 0.0 }
  0xda   :  { %v161_v26 = vpop.f32.mrf.mxu1 }
  0xdb   :  { %v206_v28 = vmax.f32 %v160_v23, 0.0  ;;  %v209_v33 = vpack.c.bf16 %v205_v25, %v205_v25 }
  0xdc   :  { %v162_v29 = vpop.f32.mrf.mxu1 }
  0xdd   :  { %v210_v30 = vpack.c.bf16 %v206_v28, %v206_v28 }
  0xde   :  { %v198_v34 = vpop.f32.mrf.mxu1 }
  0xdf   :  { %v199_v36 = vadd.f32 %v198_v34, %v70_v27  ;;  %641 = vmatprep.mubr.bf16.mxu0 %v210_v30  ;;  %v1067_v27 = vld [vmem:[%s1460_s8] ss:$0 sm:$0xff] }
  0xe0   :  { %v200_v37 = vpop.f32.mrf.mxu1  ;;  %642 = vmatmul.mubr.bf16.vlgmr.msra.gmra.mxu0 %v209_v33 }
  0xe1   :  { %v201_v38 = vadd.f32 %v200_v37, %v74_v31  ;;  %1074 = vmatpush3.bf16.msra.mxu0 %v1227_v32  ;;  %v207_v40 = vmax.f32 %v199_v36, 0.0 }
  0xe2   :  { %v202_v41 = vpop.f32.mrf.mxu1  ;;  %1075 = vmatprep.subr.bf16.mxu0 %v1228_v35 }
  0xe3   :  { %v208_v43 = vmax.f32 %v201_v38, 0.0  ;;  %v211_v47 = vpack.c.bf16 %v207_v40, %v207_v40 }
  0xe4   :  { %v203_v44 = vpop.f32.mrf.mxu1 }
  0xe5   :  { %v212_v45 = vpack.c.bf16 %v208_v43, %v208_v43  ;;  %1076 = vmatpush3.bf16.msra.mxu0 %v1229_v39 }
  0xe6   :  { %1077 = vmatprep.subr.bf16.mxu0 %v1230_v42 }
  0xe7   :  { %682 = vmatprep.mubr.bf16.mxu1 %v212_v45 }
  0xe8   :  { %683 = vmatmul.mubr.bf16.vlgmr.msra.gmra.mxu1 %v211_v47 }
  0xe9   :  { %1078 = vmatpush3.bf16.msra.mxu0 %v1231_v46  ;;  %1101 = vmatpush3.bf16.msra.mxu1 %v1242_v58 }
  0xea   :  { %1079 = vmatprep.subr.bf16.mxu0 %v1232_v48  ;;  %1102 = vmatprep.subr.bf16.mxu1 %v1276_v59 }
  0xeb   :  { %1108 = vmatprep.mubr.msk.bf16.mxu1 %vm1277_vm1, %v1276_v59 }
  0xed   :  { %1080 = vmatpush3.bf16.msra.mxu0 %v1233_v49  ;;  %1103 = vmatpush3.bf16.msra.mxu1 %v1243_v13 }
  0xee   :  { %1081 = vmatprep.subr.bf16.mxu0 %v1234_v50  ;;  %1104 = vmatprep.subr.bf16.mxu1 %v1276_v59 }
  0xf1   :  { %1082 = vmatpush3.bf16.msra.mxu0 %v1235_v51  ;;  %1105 = vmatpush3.bf16.msra.mxu1 %v1244_v14 }
  0xf2   :  { %1083 = vmatprep.subr.bf16.mxu0 %v1236_v52  ;;  %1106 = vmatprep.subr.bf16.mxu1 %v1276_v59 }
  0xf5   :  { %1084 = vmatpush3.bf16.msra.mxu0 %v1237_v53  ;;  %1107 = vmatpush3.bf16.msra.mxu1 %v1245_v16 }
  0xf6   :  { %1085 = vmatprep.subr.bf16.mxu0 %v1238_v54 }
  0xf9   :  { %1086 = vmatpush3.bf16.msra.mxu0 %v1239_v55 }
  0xfa   :  { %1087 = vmatprep.subr.bf16.mxu0 %v1240_v56 }
  0xfd   :  { %1088 = vmatpush3.bf16.msra.mxu0 %v1241_v57 }
 0x1a0   :  { %v643_v61 = vpop.f32.mrf.mxu0 }
 0x1a1   :  { %v644_v3 = vadd.f32 %v643_v61, %v282_v63 }
 0x1a2   :  { %v645_v62 = vpop.f32.mrf.mxu0 }
 0x1a3   :  { %v646_v5 = vadd.f32 %v645_v62, %v286_v1 }
 0x1a4   :  { %v647_v0 = vpop.f32.mrf.mxu0 }
 0x1a6   :  { %v648_v2 = vpop.f32.mrf.mxu0 }
 0x1a8   :  { %v684_v4 = vpop.f32.mrf.mxu1 }
 0x1a9   :  { %v685_v6 = vadd.f32 %v684_v4, %v644_v3 }
 0x1aa   :  { %v686_v7 = vpop.f32.mrf.mxu1 }
 0x1ab   :  { %v687_v8 = vadd.f32 %v686_v7, %v646_v5  ;;  %v691_v9 = vmax.f32 %v685_v6, 0.0 }
 0x1ac   :  { %v688_v10 = vpop.f32.mrf.mxu1 }
 0x1ad   :  { %v692_v11 = vmax.f32 %v687_v8, 0.0  ;;  %v693_v17 = vpack.c.bf16 %v691_v9, %v691_v9 }
 0x1ae   :  { %v689_v12 = vpop.f32.mrf.mxu1 }
 0x1af   :  { %v694_v15 = vpack.c.bf16 %v692_v11, %v692_v11 }
 0x1b1   :  { %862 = vmatprep.mubr.bf16.mxu0 %v694_v15 }
 0x1b2   :  { %863 = vmatmul.mubr.bf16.vlgmr.msra.gmra.mxu0 %v693_v17 }
 0x272   :  { %v1089_v18 = vpop.f32.mrf.mxu0 }
 0x274   :  { %v1090_v20 = vpop.f32.mrf.mxu0 }
 0x275   :  { %v1091_v21 = vadd.f32 %v1090_v20, %v1089_v18 }
 0x276   :  { %v1092_v22 = vpop.f32.mrf.mxu0 }
 0x277   :  { %v865_v23 = vadd.f32 %v1091_v21, %v1050_v19 }
 0x278   :  { %v1093_v24 = vpop.f32.mrf.mxu0 }
 0x279   :  { %v870_v25 = vmax.f32 %v865_v23, 0.0 }
 0x27b   :  { %v871_v26 = vpack.c.bf16 %v870_v25, %v870_v25 }
 0x27d   :  { %1109 = vmatmul.mubr.msk.bf16.vlgmr.msra.gmra.mxu1 %vm911_vm2, %v871_v26 }
 0x33d   :  { %v949_v28 = vpop.f32.mrf.mxu1 }
 0x33e   :  { %v950_v29 = vadd.f32 %v1067_v27, %v949_v28 }
 0x33f   :  { %v1110_v30 = vpop.f32.mrf.mxu1 }
 0x340   :  { %v956_v31 = vsel %vm955_vm3, %v950_v29, -inf }
 0x341   :  { %957 = vmax.xlane.f32.xlu0 %v956_v31  ;;  %v952_v32 = vpop.f32.mrf.mxu1 }
 0x343   :  { %v1111_v33 = vpop.f32.mrf.mxu1 }
 0x3ca   :  { %v958_v34 = vpop.xlane.xlu0 %957 }
 0x3cb   :  { %v959_v35 = vsub.f32 %v950_v29, %v958_v34 }
 0x3cd   :  { %v960_v36 = vmul.f32 1.442695, %v959_v35 }
 0x3cf   :  { %1246 = vpow2.f32 %v960_v36 }
 0x3dc   :  { %v1247_v37 = vpop.eup %1246 }
 0x3dd   :  { %v962_v38 = vsel %vm955_vm3, %v1247_v37, 0.0 }
 0x3de   :  { %963 = vadd.xlane.f32.xlu0 %v962_v38 }
 0x467   :  { %v964_v39 = vpop.xlane.xlu0 %963 }
 0x468   :  { %1248 = vrcp.f32 %v964_v39 }
 0x475   :  { %v1249_v40 = vpop.eup %1248 }
 0x476   :  { %v966_v41 = vmul.f32 %v1249_v40, %v964_v39 }
 0x478   :  { %v967_v42 = vsub.f32 2.0, %v966_v41 }
 0x47a   :  { %v968_v43 = vmul.f32 %v1249_v40, %v967_v42 }
 0x47c   :  { %v969_v44 = vmul.f32 %v1247_v37, %v968_v43 }
 0x47e   :  { %970 = vst.msk [vmem:[%s1461_s9] sm:$0xff] %vm955_vm3, %v969_v44 }
 0x47f   :  { %975 = vsyncpa [#allocation3], 1 }

</bundles_post_ra>
